<compile_context>
chip_gen: v7x
topology: tpu7x:2x2x1
jax: 0.10.0
libtpu: 0.0.40
codegen_flags: <defaults>
</compile_context>

<pallas_src>
import functools

import jax
import jax.numpy as jnp
from jax.experimental import pallas as pl
from jax.experimental.pallas import tpu as pltpu


def _round_up(n, m):
    return ((n + m - 1) // m) * m


def actor_kernel(x_ref, w1_ref, b1_ref, w2_ref, b2_ref, out_ref, *scratch,
                 num_actions, pack):
    # fc1 on the MXU: bf16 inputs, f32 accumulation; bias + ReLU in f32.
    x = x_ref[...].astype(jnp.bfloat16)
    h = jnp.dot(x, w1_ref[...], preferred_element_type=jnp.float32)
    h = jnp.maximum(h + b1_ref[...], 0.0)

    # fc2 on the MXU (hidden dim is lane-dense 128).
    logits = jnp.dot(h.astype(jnp.bfloat16), w2_ref[...],
                     preferred_element_type=jnp.float32)
    logits = logits + b2_ref[...]

    # Kill the padded action lanes so they contribute nothing to the softmax.
    a_pad = logits.shape[1]
    if num_actions < a_pad:
        col = jax.lax.broadcasted_iota(jnp.int32, logits.shape, 1)
        logits = jnp.where(col < num_actions, logits, jnp.float32(-1e30))

    # Numerically-stable softmax over dim=1. Exact normalization: the VPU/EUP
    # slots have large slack in this HBM-bound regime, so it is free.
    m = jnp.max(logits, axis=1, keepdims=True)
    e = jnp.exp(logits - m)
    probs = e / jnp.sum(e, axis=1, keepdims=True)

    if pack == 1:
        # Fallback (action dim does not divide 128): dense padded store.
        out_ref[...] = probs.astype(out_ref.dtype)
    else:
        # Lane-pack `pack` batch rows' A probabilities into one 128-lane row:
        #   packed[r, q*A:(q+1)*A] = probs[q*g + r, :A]
        # 16 static slice stores into f32 VMEM scratch, then ONE dense bf16
        # store (keeps the HBM-bound write unmasked / lane-dense).
        pack_scratch = scratch[0]
        tb = probs.shape[0]
        g = tb // pack
        for q in range(pack):
            pack_scratch[:, q * num_actions:(q + 1) * num_actions] = (
                probs[q * g:(q + 1) * g, :num_actions])
        out_ref[...] = pack_scratch[...].astype(out_ref.dtype)


def pack_actor_params(w1, b1, w2, b2):
    """Pad/pack Actor parameters once (lane-dense, bf16 weights for the MXU).
    Weights are stored transposed vs torch nn.Linear: (in_features, out_features)."""
    S, H = w1.shape
    A = w2.shape[1]
    H_pad = _round_up(H, 128)
    A_pad = _round_up(A, 128)
    w1p = jnp.zeros((S, H_pad), jnp.bfloat16).at[:, :H].set(w1.astype(jnp.bfloat16))
    b1p = jnp.zeros((1, H_pad), jnp.float32).at[:, :H].set(
        b1.reshape(1, H).astype(jnp.float32))
    w2p = jnp.zeros((H_pad, A_pad), jnp.bfloat16).at[:H, :A].set(w2.astype(jnp.bfloat16))
    b2p = jnp.zeros((1, A_pad), jnp.float32).at[:, :A].set(
        b2.reshape(1, A).astype(jnp.float32))
    return dict(w1=w1p, b1=b1p, w2=w2p, b2=b2p,
                state_size=S, hidden=H, actions=A)


def actor_forward(x, params, *, block_b=2048):
    """x: (B, state_size) float32. params: from pack_actor_params.
    Returns (B, action_size) softmax probabilities (bfloat16)."""
    B, S = x.shape
    assert S == params["state_size"]
    A = params["actions"]
    H_pad = params["w1"].shape[1]
    A_pad = params["w2"].shape[1]

    # Output lane-packing factor: pack (128 // A) rows per 128-lane output row.
    pack = 128 // A if (A <= 64 and 128 % A == 0) else 1
    # bf16 output block: second-minor dim must be a multiple of 16 -> tb must
    # be a multiple of 16*pack so g = tb // pack stays tile-aligned.
    align = 16 * pack if pack > 1 else 16

    b_min = _round_up(max(B, 1), align)
    tb = min(_round_up(block_b, align), b_min)
    # v7x has 2 TensorCores: keep >= 2 "parallel" grid steps when the batch is
    # large enough to split, so both cores get work.
    if tb >= b_min and b_min >= 2 * align:
        tb = _round_up(pl.cdiv(b_min, 2), align)
    nb = pl.cdiv(B, tb)

    # Only pad x when the whole batch is smaller than one block (tiny batches,
    # negligible cost). Ragged last blocks of multi-step grids are handled by
    # Pallas: out-of-bounds rows yield garbage that maps to batch indices >= B
    # and is dropped by the final slice, so large batches never pay an x copy.
    if B < tb:
        x = jnp.pad(x, ((0, tb - B), (0, 0)))

    g = tb // pack
    out_cols = pack * A if pack > 1 else A_pad
    out_rows = nb * g if pack > 1 else nb * tb

    kernel = functools.partial(actor_kernel, num_actions=A, pack=pack)
    scratch_shapes = [pltpu.VMEM((g, out_cols), jnp.float32)] if pack > 1 else []

    # Advisory cost: real (unpadded input / packed output) traffic.
    flops = 2 * nb * tb * (S * H_pad + H_pad * A_pad)
    bytes_accessed = (B * S * x.dtype.itemsize
                      + out_rows * out_cols * 2
                      + params["w1"].size * 2 + params["w2"].size * 2
                      + (params["b1"].size + params["b2"].size) * 4)

    out = pl.pallas_call(
        kernel,
        out_shape=jax.ShapeDtypeStruct((out_rows, out_cols), jnp.bfloat16),
        grid_spec=pltpu.PrefetchScalarGridSpec(
            num_scalar_prefetch=0,
            grid=(nb,),
            in_specs=[
                pl.BlockSpec((tb, S), lambda i: (i, 0)),         # x: batch-tiled
                pl.BlockSpec((S, H_pad), lambda i: (0, 0)),      # w1: VMEM-resident
                pl.BlockSpec((1, H_pad), lambda i: (0, 0)),      # b1: VMEM-resident
                pl.BlockSpec((H_pad, A_pad), lambda i: (0, 0)),  # w2: VMEM-resident
                pl.BlockSpec((1, A_pad), lambda i: (0, 0)),      # b2: VMEM-resident
            ],
            out_specs=pl.BlockSpec(
                (g, out_cols) if pack > 1 else (tb, A_pad), lambda i: (i, 0)),
            scratch_shapes=scratch_shapes,
        ),
        compiler_params=pltpu.CompilerParams(
            dimension_semantics=("parallel",),
            vmem_limit_bytes=32 * 1024 * 1024,
        ),
        cost_estimate=pl.CostEstimate(
            flops=flops,
            transcendentals=nb * tb * A_pad,
            bytes_accessed=bytes_accessed,
        ),
    )(x, params["w1"], params["b1"], params["w2"], params["b2"])

    if pack > 1:
        # Undo the in-kernel lane packing: (nb*g, pack*A) -> (B, A).
        probs = (out.reshape(nb, g, pack, A)
                    .transpose(0, 2, 1, 3)
                    .reshape(nb * tb, A))[:B]
    else:
        probs = out[:B, :A]
    return probs


def init_actor_params(key, state_size, hidden_size, action_size):
    """Deterministic init mimicking torch.nn.Linear default:
    U(-1/sqrt(fan_in), 1/sqrt(fan_in)). Weights stored as (in, out)."""
    k1, k2, k3, k4 = jax.random.split(key, 4)
    bound1 = 1.0 / jnp.sqrt(state_size)
    bound2 = 1.0 / jnp.sqrt(hidden_size)
    w1 = jax.random.uniform(k1, (state_size, hidden_size), jnp.float32, -bound1, bound1)
    b1 = jax.random.uniform(k2, (1, hidden_size), jnp.float32, -bound1, bound1)
    w2 = jax.random.uniform(k3, (hidden_size, action_size), jnp.float32, -bound2, bound2)
    b2 = jax.random.uniform(k4, (1, action_size), jnp.float32, -bound2, bound2)
    return w1, b1, w2, b2


if __name__ == "__main__":
    # Small, module-consistent shapes.
    batch = 2
    state_size = 16
    hidden_size = 32
    action_size = 8

    key = jax.random.PRNGKey(0)
    kx, kp = jax.random.split(key)
    x = jax.random.normal(kx, (batch, state_size), jnp.float32)
    w1, b1, w2, b2 = init_actor_params(kp, state_size, hidden_size, action_size)
    params = pack_actor_params(w1, b1, w2, b2)   # packed once, reused across calls

    probs = jax.block_until_ready(actor_forward(x, params))

    # Reference check in plain JAX (same math as the PyTorch forward).
    ref = jax.nn.softmax(jnp.maximum(x @ w1 + b1, 0.0) @ w2 + b2, axis=1)
    assert probs.shape == (batch, action_size)
    assert jnp.allclose(probs.astype(jnp.float32), ref, atol=2e-2), "mismatch (small batch)"
    assert jnp.allclose(jnp.sum(probs.astype(jnp.float32), axis=1), 1.0, atol=1e-2)

    # Larger, non-block-multiple batch: exercises the 2-step parallel grid,
    # the ragged last input block, and the packed-output unpack path.
    B2 = 300
    x2 = jax.random.normal(jax.random.PRNGKey(1), (B2, state_size), jnp.float32)
    probs2 = jax.block_until_ready(actor_forward(x2, params, block_b=512))
    ref2 = jax.nn.softmax(jnp.maximum(x2 @ w1 + b1, 0.0) @ w2 + b2, axis=1)
    assert probs2.shape == (B2, action_size)
    assert jnp.allclose(probs2.astype(jnp.float32), ref2, atol=2e-2), "mismatch (batch grid)"
    assert jnp.allclose(jnp.sum(probs2.astype(jnp.float32), axis=1), 1.0, atol=1e-2)

    print("KERNEL_OK")
</pallas_src>

<mosaic_0001>
module attributes {stable_mosaic.version = 11 : i64} {
  func.func @actor_kernel(%arg0: i32, %arg1: memref<256x16xf32, #tpu.memory_space<vmem>>, %arg2: memref<16x128xbf16, #tpu.memory_space<vmem>>, %arg3: memref<1x128xf32, #tpu.memory_space<vmem>>, %arg4: memref<128x128xbf16, #tpu.memory_space<vmem>>, %arg5: memref<1x128xf32, #tpu.memory_space<vmem>>, %arg6: memref<16x128xbf16, #tpu.memory_space<vmem>>, %arg7: memref<16x128xf32, #tpu.memory_space<vmem>>) attributes {dimension_semantics = [#tpu.dimension_semantics<parallel>], iteration_bounds = array<i64: 1>, scalar_prefetch = 0 : i64, scratch_operands = 1 : i64, tpu.core_type = #tpu.core_type<tc>, window_params = [{transform_indices = @transform_0, window_bounds = array<i64: 256, 16>}, {pipeline_mode = #tpu.pipeline_mode<synchronous>, transform_indices = @transform_1, window_bounds = array<i64: 16, 128>}, {pipeline_mode = #tpu.pipeline_mode<synchronous>, transform_indices = @transform_2, window_bounds = array<i64: 1, 128>}, {pipeline_mode = #tpu.pipeline_mode<synchronous>, transform_indices = @transform_3, window_bounds = array<i64: 128, 128>}, {pipeline_mode = #tpu.pipeline_mode<synchronous>, transform_indices = @transform_4, window_bounds = array<i64: 1, 128>}, {transform_indices = @transform_5, window_bounds = array<i64: 16, 128>}]} {
    %c0 = arith.constant 0 : index
    %c0_0 = arith.constant 0 : index
    %0 = vector.load %arg1[%c0, %c0_0] : memref<256x16xf32, #tpu.memory_space<vmem>>, vector<256x16xf32>
    %1 = arith.truncf %0 : vector<256x16xf32> to vector<256x16xbf16>
    %c0_1 = arith.constant 0 : index
    %c0_2 = arith.constant 0 : index
    %2 = vector.load %arg2[%c0_1, %c0_2] : memref<16x128xbf16, #tpu.memory_space<vmem>>, vector<16x128xbf16>
    %cst = arith.constant dense<0.000000e+00> : vector<256x128xf32>
    %3 = tpu.matmul %1, %2, %cst {dimension_numbers = #tpu.dot_dimension_numbers<[1], [0], [0], [1], [0, 0, 1, 1], [], []>} : vector<256x16xbf16>, vector<16x128xbf16>, vector<256x128xf32> -> vector<256x128xf32>
    %c0_3 = arith.constant 0 : index
    %c0_4 = arith.constant 0 : index
    %4 = vector.load %arg3[%c0_3, %c0_4] : memref<1x128xf32, #tpu.memory_space<vmem>>, vector<1x128xf32>
    %5 = vector.broadcast %4 : vector<1x128xf32> to vector<256x128xf32>
    %6 = arith.addf %3, %5 : vector<256x128xf32>
    %cst_5 = arith.constant 0.000000e+00 : f32
    %7 = vector.broadcast %cst_5 : f32 to vector<256x128xf32>
    %8 = arith.maximumf %6, %7 : vector<256x128xf32>
    %9 = arith.truncf %8 : vector<256x128xf32> to vector<256x128xbf16>
    %c0_6 = arith.constant 0 : index
    %c0_7 = arith.constant 0 : index
    %10 = vector.load %arg4[%c0_6, %c0_7] : memref<128x128xbf16, #tpu.memory_space<vmem>>, vector<128x128xbf16>
    %cst_8 = arith.constant dense<0.000000e+00> : vector<256x128xf32>
    %11 = tpu.matmul %9, %10, %cst_8 {dimension_numbers = #tpu.dot_dimension_numbers<[1], [0], [0], [1], [0, 0, 1, 1], [], []>} : vector<256x128xbf16>, vector<128x128xbf16>, vector<256x128xf32> -> vector<256x128xf32>
    %c0_9 = arith.constant 0 : index
    %c0_10 = arith.constant 0 : index
    %12 = vector.load %arg5[%c0_9, %c0_10] : memref<1x128xf32, #tpu.memory_space<vmem>>, vector<1x128xf32>
    %13 = vector.broadcast %12 : vector<1x128xf32> to vector<256x128xf32>
    %14 = arith.addf %11, %13 : vector<256x128xf32>
    %15 = tpu.iota {dimensions = array<i32: 1>} : vector<256x128xi32>
    %c8_i32 = arith.constant 8 : i32
    %16 = vector.broadcast %c8_i32 : i32 to vector<256x128xi32>
    %17 = arith.cmpi slt, %15, %16 : vector<256x128xi32>
    %cst_11 = arith.constant -1.000000e+30 : f32
    %18 = vector.broadcast %cst_11 : f32 to vector<256x128xf32>
    %19 = arith.select %17, %14, %18 : vector<256x128xi1>, vector<256x128xf32>
    %cst_12 = arith.constant dense<0xFF800000> : vector<256xf32>
    %20 = vector.multi_reduction <maximumf>, %19, %cst_12 [1] : vector<256x128xf32> to vector<256xf32>
    %21 = vector.shape_cast %20 : vector<256xf32> to vector<256x1xf32>
    %22 = vector.broadcast %21 : vector<256x1xf32> to vector<256x128xf32>
    %23 = arith.subf %19, %22 : vector<256x128xf32>
    %24 = math.exp %23 : vector<256x128xf32>
    %cst_13 = arith.constant dense<0.000000e+00> : vector<256xf32>
    %25 = vector.multi_reduction <add>, %24, %cst_13 [1] : vector<256x128xf32> to vector<256xf32>
    %26 = vector.shape_cast %25 : vector<256xf32> to vector<256x1xf32>
    %27 = vector.broadcast %26 : vector<256x1xf32> to vector<256x128xf32>
    %28 = arith.divf %24, %27 : vector<256x128xf32>
    %29 = vector.extract_strided_slice %28 {offsets = [0, 0], sizes = [16, 8], strides = [1, 1]} : vector<256x128xf32> to vector<16x8xf32>
    %c0_14 = arith.constant 0 : index
    %c0_15 = arith.constant 0 : index
    %30 = vector.load %arg7[%c0_14, %c0_15] : memref<16x128xf32, #tpu.memory_space<vmem>>, vector<16x8xf32>
    tpu.vector_store %arg7[%c0_14, %c0_15], %29 {strides = array<i32>} : memref<16x128xf32, #tpu.memory_space<vmem>>, vector<16x8xf32>,
    %31 = vector.extract_strided_slice %28 {offsets = [16, 0], sizes = [16, 8], strides = [1, 1]} : vector<256x128xf32> to vector<16x8xf32>
    %c0_16 = arith.constant 0 : index
    %c8 = arith.constant 8 : index
    %32 = vector.load %arg7[%c0_16, %c8] : memref<16x128xf32, #tpu.memory_space<vmem>>, vector<16x8xf32>
    tpu.vector_store %arg7[%c0_16, %c8], %31 {strides = array<i32>} : memref<16x128xf32, #tpu.memory_space<vmem>>, vector<16x8xf32>,
    %33 = vector.extract_strided_slice %28 {offsets = [32, 0], sizes = [16, 8], strides = [1, 1]} : vector<256x128xf32> to vector<16x8xf32>
    %c0_17 = arith.constant 0 : index
    %c16 = arith.constant 16 : index
    %34 = vector.load %arg7[%c0_17, %c16] : memref<16x128xf32, #tpu.memory_space<vmem>>, vector<16x8xf32>
    tpu.vector_store %arg7[%c0_17, %c16], %33 {strides = array<i32>} : memref<16x128xf32, #tpu.memory_space<vmem>>, vector<16x8xf32>,
    %35 = vector.extract_strided_slice %28 {offsets = [48, 0], sizes = [16, 8], strides = [1, 1]} : vector<256x128xf32> to vector<16x8xf32>
    %c0_18 = arith.constant 0 : index
    %c24 = arith.constant 24 : index
    %36 = vector.load %arg7[%c0_18, %c24] : memref<16x128xf32, #tpu.memory_space<vmem>>, vector<16x8xf32>
    tpu.vector_store %arg7[%c0_18, %c24], %35 {strides = array<i32>} : memref<16x128xf32, #tpu.memory_space<vmem>>, vector<16x8xf32>,
    %37 = vector.extract_strided_slice %28 {offsets = [64, 0], sizes = [16, 8], strides = [1, 1]} : vector<256x128xf32> to vector<16x8xf32>
    %c0_19 = arith.constant 0 : index
    %c32 = arith.constant 32 : index
    %38 = vector.load %arg7[%c0_19, %c32] : memref<16x128xf32, #tpu.memory_space<vmem>>, vector<16x8xf32>
    tpu.vector_store %arg7[%c0_19, %c32], %37 {strides = array<i32>} : memref<16x128xf32, #tpu.memory_space<vmem>>, vector<16x8xf32>,
    %39 = vector.extract_strided_slice %28 {offsets = [80, 0], sizes = [16, 8], strides = [1, 1]} : vector<256x128xf32> to vector<16x8xf32>
    %c0_20 = arith.constant 0 : index
    %c40 = arith.constant 40 : index
    %40 = vector.load %arg7[%c0_20, %c40] : memref<16x128xf32, #tpu.memory_space<vmem>>, vector<16x8xf32>
    tpu.vector_store %arg7[%c0_20, %c40], %39 {strides = array<i32>} : memref<16x128xf32, #tpu.memory_space<vmem>>, vector<16x8xf32>,
    %41 = vector.extract_strided_slice %28 {offsets = [96, 0], sizes = [16, 8], strides = [1, 1]} : vector<256x128xf32> to vector<16x8xf32>
    %c0_21 = arith.constant 0 : index
    %c48 = arith.constant 48 : index
    %42 = vector.load %arg7[%c0_21, %c48] : memref<16x128xf32, #tpu.memory_space<vmem>>, vector<16x8xf32>
    tpu.vector_store %arg7[%c0_21, %c48], %41 {strides = array<i32>} : memref<16x128xf32, #tpu.memory_space<vmem>>, vector<16x8xf32>,
    %43 = vector.extract_strided_slice %28 {offsets = [112, 0], sizes = [16, 8], strides = [1, 1]} : vector<256x128xf32> to vector<16x8xf32>
    %c0_22 = arith.constant 0 : index
    %c56 = arith.constant 56 : index
    %44 = vector.load %arg7[%c0_22, %c56] : memref<16x128xf32, #tpu.memory_space<vmem>>, vector<16x8xf32>
    tpu.vector_store %arg7[%c0_22, %c56], %43 {strides = array<i32>} : memref<16x128xf32, #tpu.memory_space<vmem>>, vector<16x8xf32>,
    %45 = vector.extract_strided_slice %28 {offsets = [128, 0], sizes = [16, 8], strides = [1, 1]} : vector<256x128xf32> to vector<16x8xf32>
    %c0_23 = arith.constant 0 : index
    %c64 = arith.constant 64 : index
    %46 = vector.load %arg7[%c0_23, %c64] : memref<16x128xf32, #tpu.memory_space<vmem>>, vector<16x8xf32>
    tpu.vector_store %arg7[%c0_23, %c64], %45 {strides = array<i32>} : memref<16x128xf32, #tpu.memory_space<vmem>>, vector<16x8xf32>,
    %47 = vector.extract_strided_slice %28 {offsets = [144, 0], sizes = [16, 8], strides = [1, 1]} : vector<256x128xf32> to vector<16x8xf32>
    %c0_24 = arith.constant 0 : index
    %c72 = arith.constant 72 : index
    %48 = vector.load %arg7[%c0_24, %c72] : memref<16x128xf32, #tpu.memory_space<vmem>>, vector<16x8xf32>
    tpu.vector_store %arg7[%c0_24, %c72], %47 {strides = array<i32>} : memref<16x128xf32, #tpu.memory_space<vmem>>, vector<16x8xf32>,
    %49 = vector.extract_strided_slice %28 {offsets = [160, 0], sizes = [16, 8], strides = [1, 1]} : vector<256x128xf32> to vector<16x8xf32>
    %c0_25 = arith.constant 0 : index
    %c80 = arith.constant 80 : index
    %50 = vector.load %arg7[%c0_25, %c80] : memref<16x128xf32, #tpu.memory_space<vmem>>, vector<16x8xf32>
    tpu.vector_store %arg7[%c0_25, %c80], %49 {strides = array<i32>} : memref<16x128xf32, #tpu.memory_space<vmem>>, vector<16x8xf32>,
    %51 = vector.extract_strided_slice %28 {offsets = [176, 0], sizes = [16, 8], strides = [1, 1]} : vector<256x128xf32> to vector<16x8xf32>
    %c0_26 = arith.constant 0 : index
    %c88 = arith.constant 88 : index
    %52 = vector.load %arg7[%c0_26, %c88] : memref<16x128xf32, #tpu.memory_space<vmem>>, vector<16x8xf32>
    tpu.vector_store %arg7[%c0_26, %c88], %51 {strides = array<i32>} : memref<16x128xf32, #tpu.memory_space<vmem>>, vector<16x8xf32>,
    %53 = vector.extract_strided_slice %28 {offsets = [192, 0], sizes = [16, 8], strides = [1, 1]} : vector<256x128xf32> to vector<16x8xf32>
    %c0_27 = arith.constant 0 : index
    %c96 = arith.constant 96 : index
    %54 = vector.load %arg7[%c0_27, %c96] : memref<16x128xf32, #tpu.memory_space<vmem>>, vector<16x8xf32>
    tpu.vector_store %arg7[%c0_27, %c96], %53 {strides = array<i32>} : memref<16x128xf32, #tpu.memory_space<vmem>>, vector<16x8xf32>,
    %55 = vector.extract_strided_slice %28 {offsets = [208, 0], sizes = [16, 8], strides = [1, 1]} : vector<256x128xf32> to vector<16x8xf32>
    %c0_28 = arith.constant 0 : index
    %c104 = arith.constant 104 : index
    %56 = vector.load %arg7[%c0_28, %c104] : memref<16x128xf32, #tpu.memory_space<vmem>>, vector<16x8xf32>
    tpu.vector_store %arg7[%c0_28, %c104], %55 {strides = array<i32>} : memref<16x128xf32, #tpu.memory_space<vmem>>, vector<16x8xf32>,
    %57 = vector.extract_strided_slice %28 {offsets = [224, 0], sizes = [16, 8], strides = [1, 1]} : vector<256x128xf32> to vector<16x8xf32>
    %c0_29 = arith.constant 0 : index
    %c112 = arith.constant 112 : index
    %58 = vector.load %arg7[%c0_29, %c112] : memref<16x128xf32, #tpu.memory_space<vmem>>, vector<16x8xf32>
    tpu.vector_store %arg7[%c0_29, %c112], %57 {strides = array<i32>} : memref<16x128xf32, #tpu.memory_space<vmem>>, vector<16x8xf32>,
    %59 = vector.extract_strided_slice %28 {offsets = [240, 0], sizes = [16, 8], strides = [1, 1]} : vector<256x128xf32> to vector<16x8xf32>
    %c0_30 = arith.constant 0 : index
    %c120 = arith.constant 120 : index
    %60 = vector.load %arg7[%c0_30, %c120] : memref<16x128xf32, #tpu.memory_space<vmem>>, vector<16x8xf32>
    tpu.vector_store %arg7[%c0_30, %c120], %59 {strides = array<i32>} : memref<16x128xf32, #tpu.memory_space<vmem>>, vector<16x8xf32>,
    %c0_31 = arith.constant 0 : index
    %c0_32 = arith.constant 0 : index
    %61 = vector.load %arg7[%c0_31, %c0_32] : memref<16x128xf32, #tpu.memory_space<vmem>>, vector<16x128xf32>
    %62 = arith.truncf %61 : vector<16x128xf32> to vector<16x128xbf16>
    %c0_33 = arith.constant 0 : index
    %c0_34 = arith.constant 0 : index
    %63 = vector.load %arg6[%c0_33, %c0_34] : memref<16x128xbf16, #tpu.memory_space<vmem>>, vector<16x128xbf16>
    tpu.vector_store %arg6[%c0_33, %c0_34], %62 {strides = array<i32>} : memref<16x128xbf16, #tpu.memory_space<vmem>>, vector<16x128xbf16>,
    return
  }
  func.func @transform_0(%arg0: i32) -> (i32, i32) {
    %c0_i32 = arith.constant 0 : i32
    %c0_i32_0 = arith.constant 0 : i32
    return %arg0, %c0_i32 : i32, i32
  }
  func.func @transform_1(%arg0: i32) -> (i32, i32) {
    %c0_i32 = arith.constant 0 : i32
    %c0_i32_0 = arith.constant 0 : i32
    %c0_i32_1 = arith.constant 0 : i32
    return %c0_i32, %c0_i32_0 : i32, i32
  }
  func.func @transform_2(%arg0: i32) -> (i32, i32) {
    %c0_i32 = arith.constant 0 : i32
    %c0_i32_0 = arith.constant 0 : i32
    %c0_i32_1 = arith.constant 0 : i32
    return %c0_i32, %c0_i32_0 : i32, i32
  }
  func.func @transform_3(%arg0: i32) -> (i32, i32) {
    %c0_i32 = arith.constant 0 : i32
    %c0_i32_0 = arith.constant 0 : i32
    %c0_i32_1 = arith.constant 0 : i32
    return %c0_i32, %c0_i32_0 : i32, i32
  }
  func.func @transform_4(%arg0: i32) -> (i32, i32) {
    %c0_i32 = arith.constant 0 : i32
    %c0_i32_0 = arith.constant 0 : i32
    %c0_i32_1 = arith.constant 0 : i32
    return %c0_i32, %c0_i32_0 : i32, i32
  }
  func.func @transform_5(%arg0: i32) -> (i32, i32) {
    %c0_i32 = arith.constant 0 : i32
    %c0_i32_0 = arith.constant 0 : i32
    return %arg0, %c0_i32 : i32, i32
  }
}

</mosaic_0001>

<bundles_post_ra>
// kernel: tpu_custom_call.1
= control target key start
LH: loop header
LB: loop body
LE: loop exit
PB: predicated region body
PF: predicated region fallthrough
CT: control target
= control target key end

     0   :  { %vm85_vm0 = vcmask 130048   ;;  %s2046_s0 = inlined_call_operand.vmem [shape: f32[256,16], index: 0, kind: input, shape index: {}]   ;;  %s2047_s1 = inlined_call_operand.vmem [shape: bf16[16,128], index: 1, kind: input, shape index: {}]   ;;  %s2048_s2 = inlined_call_operand.vmem [shape: f32[1,128], index: 2, kind: input, shape index: {}]   ;;  %s2049_s3 = inlined_call_operand.vmem [shape: bf16[128,128], index: 3, kind: input, shape index: {}]   ;;  %s2050_s4 = inlined_call_operand.vmem [shape: f32[1,128], index: 4, kind: input, shape index: {}]   ;;  %s2051_s5 = inlined_call_operand.hbm [shape: bf16[16,128], index: 5, kind: output, shape index: {}]  }
   0x1   :  { %v1286_v0 = vld [vmem:[%s2047_s1] sm:$0xff]   ;;  %v23_v2 = vld [vmem:[%s2046_s0 + $0x8] sm:$0xff]  ;;  %v24_v3 = vld [vmem:[%s2046_s0 + $0x10] sm:$0xff] }
   0x2   :  { %v22_v1 = vld [vmem:[%s2046_s0] sm:$0xff]  ;;  %1171 = vmatprep.subr.bf16.mxu0 %v1286_v0  ;;  %v25_v5 = vld [vmem:[%s2046_s0 + $0x18] sm:$0xff]  ;;  %v27_v7 = vld [vmem:[%s2046_s0 + $0x28] sm:$0xff] }
   0x3   :  { %v54_v4 = vpack.c.bf16 %v23_v2, %v22_v1  ;;  %v26_v6 = vld [vmem:[%s2046_s0 + $0x20] sm:$0xff]  ;;  %1172 = vmatpush3.bf16.msra.mxu0 %v1286_v0  ;;  %v55_v8 = vpack.c.bf16 %v25_v5, %v24_v3  ;;  %v28_v10 = vld [vmem:[%s2046_s0 + $0x30] sm:$0xff]  ;;  %v29_v11 = vld [vmem:[%s2046_s0 + $0x38] sm:$0xff] }
   0x4   :  { %v56_v9 = vpack.c.bf16 %v27_v7, %v26_v6  ;;  %v30_v12 = vld [vmem:[%s2046_s0 + $0x40] sm:$0xff]  ;;  %v31_v13 = vld [vmem:[%s2046_s0 + $0x48] sm:$0xff]  ;;  %v57_v14 = vpack.c.bf16 %v29_v11, %v28_v10  ;;  %v32_v17 = vld [vmem:[%s2046_s0 + $0x50] sm:$0xff] }
   0x5   :  { %1173 = vmatprep.mubr.msk.bf16.mxu0 %vm85_vm0, %v54_v4  ;;  %v58_v15 = vpack.c.bf16 %v31_v13, %v30_v12  ;;  %v1287_v16 = vld [vmem:[%s2049_s3] sm:$0xff]   ;;  %v33_v18 = vld [vmem:[%s2046_s0 + $0x58] sm:$0xff]  ;;  %v1288_v19 = vld [vmem:[%s2049_s3 + $0x8] sm:$0xff]  }
   0x6   :  { %1174 = vmatmul.mubr.msk.bf16.vlgmr.msra.gmra.mrb[0].mxu0 %vm85_vm0, %v55_v8  ;;  %v34_v20 = vld [vmem:[%s2046_s0 + $0x60] sm:$0xff]  ;;  %1205 = vmatprep.subr.bf16.mxu0 %v1287_v16  ;;  %v35_v21 = vld [vmem:[%s2046_s0 + $0x68] sm:$0xff]  ;;  %v1289_v22 = vld [vmem:[%s2049_s3 + $0x10] sm:$0xff]   ;;  %v59_v23 = vpack.c.bf16 %v33_v18, %v32_v17 }
   0x7   :  { %1177 = vmatprep.mubr.msk.bf16.mxu0 %vm85_vm0, %v56_v9  ;;  %1206 = vmatpush3.bf16.msra.mxu0 %v1287_v16  ;;  %v60_v24 = vpack.c.bf16 %v35_v21, %v34_v20 }
   0x8   :  { %1207 = vmatprep.subr.bf16.mxu0 %v1288_v19  ;;  %1253 = vmatprep.subr.bf16.mxu1 %v1287_v16 }
   0x9   :  { %1261 = vmatpush3.bf16.msra.mxu1 %v1287_v16 }
   0xa   :  { %1254 = vmatprep.subr.bf16.mxu1 %v1288_v19 }
   0xb   :  { %1208 = vmatpush3.bf16.msra.mxu0 %v1288_v19 }
   0xe   :  { %1178 = vmatmul.mubr.msk.bf16.gmra.mrb[4].mxu0 %vm85_vm0, %v57_v14 }
   0xf   :  { %1181 = vmatprep.mubr.msk.bf16.mxu0 %vm85_vm0, %v58_v15 }
  0x10   :  { %10 = vsyncpa [#allocation4], 0  ;;  %1209 = vmatprep.subr.bf16.mxu0 %v1289_v22  ;;  %v1290_v25 = vld [vmem:[%s2049_s3 + $0x18] sm:$0xff]   ;;  %1262 = vmatpush3.bf16.msra.mxu1 %v1288_v19  ;;  %v36_v26 = vld [vmem:[%s2046_s0 + $0x70] sm:$0xff]  ;;  %s1448_s23 = smov 24   ;;  %s1449_s24 = smov 16  }
  0x11   :  { %1255 = vmatprep.subr.bf16.mxu1 %v1289_v22  ;;  %v37_v27 = vld [vmem:[%s2046_s0 + $0x78] sm:$0xff]  ;;  %1210 = vmatpush3.bf16.msra.mxu0 %v1289_v22  ;;  %v38_v28 = vld [vmem:[%s2046_s0 + $0x80] sm:$0xff]  ;;  %v39_v29 = vld [vmem:[%s2046_s0 + $0x88] sm:$0xff]  ;;  %s1450_s25 = smov 40   ;;  %s1451_s26 = smov 32   ;;  %vm898_vm2 = vcmask 64512  }
  0x12   :  { %1211 = vmatprep.subr.bf16.mxu0 %v1290_v25  ;;  %v1291_v30 = vld [vmem:[%s2049_s3 + $0x20] sm:$0xff]   ;;  %v61_v31 = vpack.c.bf16 %v37_v27, %v36_v26  ;;  %v62_v32 = vpack.c.bf16 %v39_v29, %v38_v28  ;;  %v1292_v33 = vld [vmem:[%s2049_s3 + $0x28] sm:$0xff]   ;;  %v40_v34 = vld [vmem:[%s2046_s0 + $0x90] sm:$0xff]  ;;  %s1452_s27 = smov 56   ;;  %s1453_s1 = smov 48   ;;  %vm909_vm3 = vcmask 130112  }
  0x13   :  { %v41_v35 = vld [vmem:[%s2046_s0 + $0x98] sm:$0xff]  ;;  %v42_v36 = vld [vmem:[%s2046_s0 + $0xa0] sm:$0xff]  ;;  %v43_v37 = vld [vmem:[%s2046_s0 + $0xa8] sm:$0xff]  ;;  %s1454_s28 = smov 72   ;;  %s1455_s29 = smov 64   ;;  %vm920_vm4 = vcmask 195712  }
  0x14   :  { %1263 = vmatpush3.bf16.msra.mxu1 %v1289_v22  ;;  %v63_v38 = vpack.c.bf16 %v41_v35, %v40_v34  ;;  %v64_v39 = vpack.c.bf16 %v43_v37, %v42_v36  ;;  %v44_v40 = vld [vmem:[%s2046_s0 + $0xb0] sm:$0xff]  ;;  %v45_v41 = vld [vmem:[%s2046_s0 + $0xb8] sm:$0xff]  ;;  %v46_v42 = vld [vmem:[%s2046_s0 + $0xc0] sm:$0xff]  ;;  %s1456_s30 = smov 88   ;;  %s1457_s6 = smov 80   ;;  %vm931_vm5 = vcmask 261312  }
  0x15   :  { %1256 = vmatprep.subr.bf16.mxu1 %v1290_v25  ;;  %1212 = vmatpush3.bf16.msra.mxu0 %v1290_v25  ;;  %v47_v43 = vld [vmem:[%s2046_s0 + $0xc8] sm:$0xff]  ;;  %v65_v44 = vpack.c.bf16 %v45_v41, %v44_v40  ;;  %v48_v46 = vld [vmem:[%s2046_s0 + $0xd0] sm:$0xff]  ;;  %v49_v47 = vld [vmem:[%s2046_s0 + $0xd8] sm:$0xff]  ;;  %s1458_s7 = smov 104   ;;  %s1459_s8 = smov 96   ;;  %vm942_vm6 = vcmask 326912  }
  0x16   :  { %1182 = vmatmul.mubr.msk.bf16.gmra.mrb[8].mxu0 %vm85_vm0, %v59_v23  ;;  %1213 = vmatprep.subr.bf16.mxu0 %v1291_v30  ;;  %v66_v45 = vpack.c.bf16 %v47_v43, %v46_v42  ;;  %v50_v48 = vld [vmem:[%s2046_s0 + $0xe0] sm:$0xff]  ;;  %v51_v49 = vld [vmem:[%s2046_s0 + $0xe8] sm:$0xff]  ;;  %v67_v50 = vpack.c.bf16 %v49_v47, %v48_v46  ;;  %v52_v52 = vld [vmem:[%s2046_s0 + $0xf0] sm:$0xff]  ;;  %s1460_s9 = smov 112   ;;  %s1461_s10 = smov 120   ;;  %vm953_vm7 = vcmask 392512  }
  0x17   :  { %1185 = vmatprep.mubr.msk.bf16.mxu0 %vm85_vm0, %v60_v24  ;;  %v68_v51 = vpack.c.bf16 %v51_v49, %v50_v48  ;;  %v53_v53 = vld [vmem:[%s2046_s0 + $0xf8] sm:$0xff]  ;;  %v1293_v55 = vld [vmem:[%s2049_s3 + $0x30] sm:$0xff]   ;;  %v1636_v57 = vld [vmem:[%s2048_s2] ss:$0 sm:$0xff]  ;;  %vm964_vm8 = vcmask 458112   ;;  %vm975_vm9 = vcmask 523712  }
  0x18   :  { %1264 = vmatpush3.bf16.msra.mxu1 %v1290_v25  ;;  %v69_v54 = vpack.c.bf16 %v53_v53, %v52_v52  ;;  %v1294_v56 = vld [vmem:[%s2049_s3 + $0x38] sm:$0xff]   ;;  %vm986_vm10 = vcmask 589312   ;;  %vm997_vm11 = vcmask 654912   ;;  %vm1008_vm12 = vcmask 720512   ;;  %s1462_s11 = smov [#allocation3]  }
  0x19   :  { %1257 = vmatprep.subr.bf16.mxu1 %v1291_v30  ;;  %1214 = vmatpush3.bf16.msra.mxu0 %v1291_v30  ;;  %vm1019_vm13 = vcmask 786112   ;;  %vm1030_vm14 = vcmask 851712   ;;  %vm1041_vm15 = vcmask 917312   ;;  %s1083_s12 = sshll.u32 %s1462_s11, 4  ;;  %s1084_s12 = int_to_ptr.vmem [resolvable:$true] %s1083_s12 }
  0x1a   :  { %1215 = vmatprep.subr.bf16.mxu0 %v1292_v33  ;;  %s1423_s13 = scalar_lea.vmem %s1084_s12, 128  ;;  %p1428_p1 = scmp.lt.s32.totalorder %s1084_s12, %s1084_s12 }
  0x1b   :  { %p1424_p0 = scmp.ne.s32.totalorder %s1084_s12, %s1423_s13  ;;  %p1429_p2 = scmp.lt.s32.totalorder %s1423_s13, %s1423_s13 }
  0x1c   :  { %1265 = vmatpush3.bf16.msra.mxu1 %v1291_v30 }
  0x1d   :  { %1258 = vmatprep.subr.bf16.mxu1 %v1292_v33  ;;  %1216 = vmatpush3.bf16.msra.mxu0 %v1292_v33  ;;  %p1430_p3 = por %p1429_p2, %p1428_p1 }
  0x1e   :  { %1186 = vmatmul.mubr.msk.bf16.gmra.mrb[12].mxu0 %vm85_vm0, %v61_v31  ;;  %1217 = vmatprep.subr.bf16.mxu0 %v1293_v55 }
  0x1f   :  { %1189 = vmatprep.mubr.msk.bf16.mxu0 %vm85_vm0, %v62_v32  ;;  %p1431_p4 = pnand %p1430_p3, %p1424_p0 }
  0x20   :  { %1266 = vmatpush3.bf16.msra.mxu1 %v1292_v33 }
  0x21   :  { %1259 = vmatprep.subr.bf16.mxu1 %v1293_v55  ;;  %1218 = vmatpush3.bf16.msra.mxu0 %v1293_v55 }
  0x22   :  { %1219 = vmatprep.subr.bf16.mxu0 %v1294_v56 }
  0x24   :  { %1267 = vmatpush3.bf16.msra.mxu1 %v1293_v55 }
  0x25   :  { %1260 = vmatprep.subr.bf16.mxu1 %v1294_v56  ;;  %1220 = vmatpush3.bf16.msra.mxu0 %v1294_v56 }
  0x26   :  { %1190 = vmatmul.mubr.msk.bf16.gmra.mrb[16].mxu0 %vm85_vm0, %v63_v38 }
  0x27   :  { %1193 = vmatprep.mubr.msk.bf16.mxu0 %vm85_vm0, %v64_v39 }
  0x28   :  { %1268 = vmatpush3.bf16.msra.mxu1 %v1294_v56 }
  0x2e   :  { %1194 = vmatmul.mubr.msk.bf16.gmra.mrb[20].mxu0 %vm85_vm0, %v65_v44 }
  0x2f   :  { %1197 = vmatprep.mubr.msk.bf16.mxu0 %vm85_vm0, %v66_v45 }
  0x36   :  { %1198 = vmatmul.mubr.msk.bf16.gmra.mrb[24].mxu0 %vm85_vm0, %v67_v50 }
  0x37   :  { %1201 = vmatprep.mubr.msk.bf16.mxu0 %vm85_vm0, %v68_v51 }
  0x3e   :  { %1202 = vmatmul.mubr.msk.bf16.gmra.mrb[28].mxu0 %vm85_vm0, %v69_v54  ;;  %vm1052_vm0 = vcmask 982912  }
  0xd9   :  { %v1175_v58 = vpop.f32.mrb[0].mxu0 }
  0xda   :  { %v177_v59 = vadd.f32 %v1175_v58, %v1636_v57  ;;  %v168_v60 = vpop.f32.mrb[1].mxu0 }
  0xdb   :  { %v169_v61 = vadd.f32 %v1636_v57, %v168_v60  ;;  %v1176_v62 = vpop.f32.mrb[2].mxu0 }
  0xdc   :  { %v180_v63 = vadd.f32 %v1176_v62, %v1636_v57  ;;  %v171_v0 = vpop.f32.mrb[3].mxu0  ;;  %v297_v2 = vmax.f32 %v177_v59, 0.0 }
  0xdd   :  { %v172_v1 = vadd.f32 %v1636_v57, %v171_v0  ;;  %v295_v4 = vmax.f32 %v169_v61, 0.0 }
  0xde   :  { %v298_v3 = vmax.f32 %v180_v63, 0.0 }
  0xdf   :  { %v296_v5 = vmax.f32 %v172_v1, 0.0 }
  0xe0   :  { %v328_v6 = vpack.c.bf16 %v298_v3, %v297_v2 }
  0xe1   :  { %v327_v7 = vpack.c.bf16 %v296_v5, %v295_v4  ;;  %v1179_v8 = vpop.f32.mrb[4].mxu0 }
  0xe2   :  { %v193_v9 = vadd.f32 %v1179_v8, %v1636_v57  ;;  %v184_v10 = vpop.f32.mrb[5].mxu0 }
  0xe3   :  { %v185_v11 = vadd.f32 %v1636_v57, %v184_v10  ;;  %v1180_v12 = vpop.f32.mrb[6].mxu0  ;;  %1221 = vmatprep.mubr.bf16.mxu0 %v327_v7 }
  0xe4   :  { %v196_v13 = vadd.f32 %v1180_v12, %v1636_v57  ;;  %v187_v14 = vpop.f32.mrb[7].mxu0  ;;  %1222 = vmatmul.mubr.bf16.vlgmr.msra.gmra.mrb[32].mxu0 %v328_v6  ;;  %v301_v16 = vmax.f32 %v193_v9, 0.0 }
  0xe5   :  { %v188_v15 = vadd.f32 %v1636_v57, %v187_v14  ;;  %v299_v18 = vmax.f32 %v185_v11, 0.0 }
  0xe6   :  { %v302_v17 = vmax.f32 %v196_v13, 0.0 }
  0xe7   :  { %v300_v19 = vmax.f32 %v188_v15, 0.0 }
  0xe8   :  { %v330_v20 = vpack.c.bf16 %v302_v17, %v301_v16 }
  0xe9   :  { %v1183_v21 = vpop.f32.mrb[8].mxu0  ;;  %v329_v22 = vpack.c.bf16 %v300_v19, %v299_v18 }
  0xea   :  { %v209_v23 = vadd.f32 %v1183_v21, %v1636_v57  ;;  %v200_v24 = vpop.f32.mrb[9].mxu0 }
  0xeb   :  { %v201_v25 = vadd.f32 %v1636_v57, %v200_v24  ;;  %v1184_v26 = vpop.f32.mrb[10].mxu0  ;;  %1225 = vmatprep.mubr.bf16.mxu1 %v329_v22 }
  0xec   :  { %v305_v27 = vmax.f32 %v209_v23, 0.0  ;;  %v212_v28 = vadd.f32 %v1184_v26, %v1636_v57  ;;  %v203_v29 = vpop.f32.mrb[11].mxu0  ;;  %1226 = vmatmul.mubr.bf16.vlgmr.msra.gmra.mrb[0].mxu1 %v330_v20 }
  0xed   :  { %v303_v30 = vmax.f32 %v201_v25, 0.0  ;;  %v204_v31 = vadd.f32 %v1636_v57, %v203_v29 }
  0xee   :  { %v306_v32 = vmax.f32 %v212_v28, 0.0 }
  0xef   :  { %v304_v33 = vmax.f32 %v204_v31, 0.0 }
  0xf0   :  { %v332_v34 = vpack.c.bf16 %v306_v32, %v305_v27 }
  0xf1   :  { %v331_v35 = vpack.c.bf16 %v304_v33, %v303_v30  ;;  %v1187_v36 = vpop.f32.mrb[12].mxu0 }
  0xf2   :  { %v225_v37 = vadd.f32 %v1187_v36, %v1636_v57  ;;  %v216_v38 = vpop.f32.mrb[13].mxu0 }
  0xf3   :  { %v217_v39 = vadd.f32 %v1636_v57, %v216_v38  ;;  %v1188_v40 = vpop.f32.mrb[14].mxu0  ;;  %1229 = vmatprep.mubr.bf16.mxu1 %v331_v35 }
  0xf4   :  { %v309_v41 = vmax.f32 %v225_v37, 0.0  ;;  %v228_v42 = vadd.f32 %v1188_v40, %v1636_v57  ;;  %v219_v43 = vpop.f32.mrb[15].mxu0  ;;  %1230 = vmatmul.mubr.bf16.gmra.mrb[4].mxu1 %v332_v34 }
  0xf5   :  { %v307_v44 = vmax.f32 %v217_v39, 0.0  ;;  %v220_v45 = vadd.f32 %v1636_v57, %v219_v43  ;;  %v575_v43 = vlaneseq }
  0xf6   :  { %v310_v46 = vmax.f32 %v228_v42, 0.0 }
  0xf7   :  { %v308_v47 = vmax.f32 %v220_v45, 0.0  ;;  %v1675_v45 = vld [vmem:[%s2050_s4] ss:$0 sm:$0xff]  ;;  %s1447_s4 = smov 8  }
  0xf8   :  { %v334_v48 = vpack.c.bf16 %v310_v46, %v309_v41 }
  0xf9   :  { %v333_v49 = vpack.c.bf16 %v308_v47, %v307_v44  ;;  %v1191_v50 = vpop.f32.mrb[16].mxu0  ;;  %v1670_v44 = vand.u32 127, %v575_v43 }
  0xfa   :  { %v241_v51 = vadd.f32 %v1191_v50, %v1636_v57  ;;  %v232_v52 = vpop.f32.mrb[17].mxu0 }
  0xfb   :  { %v233_v53 = vadd.f32 %v1636_v57, %v232_v52  ;;  %v1192_v54 = vpop.f32.mrb[18].mxu0  ;;  %1233 = vmatprep.mubr.bf16.mxu1 %v333_v49  ;;  %vm577_vm1 = vcmp.lt.s32.totalorder %v1670_v44, 8 }
  0xfc   :  { %v313_v55 = vmax.f32 %v241_v51, 0.0  ;;  %v244_v56 = vadd.f32 %v1192_v54, %v1636_v57  ;;  %v235_v58 = vpop.f32.mrb[19].mxu0  ;;  %1234 = vmatmul.mubr.bf16.gmra.mrb[8].mxu1 %v334_v48 }
  0xfd   :  { %v311_v59 = vmax.f32 %v233_v53, 0.0  ;;  %v236_v60 = vadd.f32 %v1636_v57, %v235_v58 }
  0xfe   :  { %v314_v61 = vmax.f32 %v244_v56, 0.0 }
  0xff   :  { %v312_v62 = vmax.f32 %v236_v60, 0.0 }
 0x100   :  { %v336_v63 = vpack.c.bf16 %v314_v61, %v313_v55 }
 0x101   :  { %v335_v0 = vpack.c.bf16 %v312_v62, %v311_v59  ;;  %v1195_v1 = vpop.f32.mrb[20].mxu0 }
 0x102   :  { %v257_v2 = vadd.f32 %v1195_v1, %v1636_v57  ;;  %v248_v3 = vpop.f32.mrb[21].mxu0 }
 0x103   :  { %v249_v4 = vadd.f32 %v1636_v57, %v248_v3  ;;  %v1196_v5 = vpop.f32.mrb[22].mxu0  ;;  %1237 = vmatprep.mubr.bf16.mxu1 %v335_v0 }
 0x104   :  { %v317_v6 = vmax.f32 %v257_v2, 0.0  ;;  %v260_v7 = vadd.f32 %v1196_v5, %v1636_v57  ;;  %v251_v8 = vpop.f32.mrb[23].mxu0  ;;  %1238 = vmatmul.mubr.bf16.gmra.mrb[12].mxu1 %v336_v63 }
 0x105   :  { %v315_v9 = vmax.f32 %v249_v4, 0.0  ;;  %v252_v10 = vadd.f32 %v1636_v57, %v251_v8 }
 0x106   :  { %v318_v11 = vmax.f32 %v260_v7, 0.0 }
 0x107   :  { %v316_v12 = vmax.f32 %v252_v10, 0.0 }
 0x108   :  { %v338_v13 = vpack.c.bf16 %v318_v11, %v317_v6 }
 0x109   :  { %v337_v14 = vpack.c.bf16 %v316_v12, %v315_v9  ;;  %v1199_v15 = vpop.f32.mrb[24].mxu0 }
 0x10a   :  { %v273_v16 = vadd.f32 %v1199_v15, %v1636_v57  ;;  %v264_v17 = vpop.f32.mrb[25].mxu0 }
 0x10b   :  { %v265_v18 = vadd.f32 %v1636_v57, %v264_v17  ;;  %v1200_v19 = vpop.f32.mrb[26].mxu0  ;;  %1241 = vmatprep.mubr.bf16.mxu1 %v337_v14 }
 0x10c   :  { %v321_v20 = vmax.f32 %v273_v16, 0.0  ;;  %v276_v21 = vadd.f32 %v1200_v19, %v1636_v57  ;;  %v267_v22 = vpop.f32.mrb[27].mxu0  ;;  %1242 = vmatmul.mubr.bf16.gmra.mrb[16].mxu1 %v338_v13 }
 0x10d   :  { %v319_v23 = vmax.f32 %v265_v18, 0.0  ;;  %v268_v24 = vadd.f32 %v1636_v57, %v267_v22 }
 0x10e   :  { %v322_v25 = vmax.f32 %v276_v21, 0.0 }
 0x10f   :  { %v320_v26 = vmax.f32 %v268_v24, 0.0 }
 0x110   :  { %v340_v27 = vpack.c.bf16 %v322_v25, %v321_v20 }
 0x111   :  { %v339_v28 = vpack.c.bf16 %v320_v26, %v319_v23  ;;  %v1203_v29 = vpop.f32.mrb[28].mxu0 }
 0x112   :  { %v289_v30 = vadd.f32 %v1203_v29, %v1636_v57  ;;  %v280_v31 = vpop.f32.mrb[29].mxu0 }
 0x113   :  { %v281_v32 = vadd.f32 %v1636_v57, %v280_v31  ;;  %v1204_v33 = vpop.f32.mrb[30].mxu0  ;;  %1245 = vmatprep.mubr.bf16.mxu1 %v339_v28 }
 0x114   :  { %v325_v34 = vmax.f32 %v289_v30, 0.0  ;;  %v292_v35 = vadd.f32 %v1204_v33, %v1636_v57  ;;  %v283_v36 = vpop.f32.mrb[31].mxu0  ;;  %1246 = vmatmul.mubr.bf16.gmra.mrb[20].mxu1 %v340_v27 }
 0x115   :  { %v323_v37 = vmax.f32 %v281_v32, 0.0  ;;  %v284_v38 = vadd.f32 %v1636_v57, %v283_v36 }
 0x116   :  { %v326_v39 = vmax.f32 %v292_v35, 0.0 }
 0x117   :  { %v324_v40 = vmax.f32 %v284_v38, 0.0 }
 0x118   :  { %v342_v41 = vpack.c.bf16 %v326_v39, %v325_v34 }
 0x119   :  { %v341_v42 = vpack.c.bf16 %v324_v40, %v323_v37 }
 0x11b   :  { %1249 = vmatprep.mubr.bf16.mxu1 %v341_v42 }
 0x11c   :  { %1250 = vmatmul.mubr.bf16.gmra.mrb[24].mxu1 %v342_v41 }
 0x1b7   :  { %v1223_v46 = vpop.f32.mrb[32].mxu0 }
 0x1b8   :  { %v457_v47 = vadd.f32 %v1223_v46, %v1675_v45  ;;  %v448_v57 = vpop.f32.mrb[33].mxu0 }
 0x1b9   :  { %v449_v48 = vadd.f32 %v1675_v45, %v448_v57  ;;  %v1224_v49 = vpop.f32.mrb[34].mxu0 }
 0x1ba   :  { %v460_v50 = vadd.f32 %v1224_v49, %v1675_v45  ;;  %v451_v51 = vpop.f32.mrb[35].mxu0  ;;  %v1683_v52 = vsel %vm577_vm1, %v457_v47, -1e+30 }
 0x1bb   :  { %v452_v53 = vadd.f32 %v1675_v45, %v451_v51  ;;  %614 = vmax.xlane.f32.xlu0 %v1683_v52  ;;  %v1689_v54 = vsel %vm577_vm1, %v449_v48, -1e+30 }
 0x1bc   :  { %v1697_v56 = vsel %vm577_vm1, %v460_v50, -1e+30 }
 0x1bd   :  { %v1693_v55 = vsel %vm577_vm1, %v452_v53, -1e+30 }
 0x1bf   :  { %v1227_v58 = vpop.f32.mrb[0].mxu1  ;;  %616 = vmax.xlane.f32.xlu0 %v1697_v56 }
 0x1c0   :  { %v473_v59 = vadd.f32 %v1227_v58, %v1675_v45  ;;  %v464_v60 = vpop.f32.mrb[1].mxu1 }
 0x1c1   :  { %v465_v61 = vadd.f32 %v1675_v45, %v464_v60  ;;  %v1228_v62 = vpop.f32.mrb[2].mxu1 }
 0x1c2   :  { %v467_v63 = vpop.f32.mrb[3].mxu1  ;;  %v1704_v0 = vsel %vm577_vm1, %v473_v59, -1e+30  ;;  %v476_v1 = vadd.f32 %v1228_v62, %v1675_v45 }
 0x1c3   :  { %622 = vmax.xlane.f32.xlu0 %v1704_v0  ;;  %v1710_v2 = vsel %vm577_vm1, %v465_v61, -1e+30  ;;  %v468_v3 = vadd.f32 %v1675_v45, %v467_v63 }
 0x1c4   :  { %618 = vmax.xlane.f32.xlu1 %v1710_v2  ;;  %v1716_v5 = vsel %vm577_vm1, %v476_v1, -1e+30 }
 0x1c5   :  { %v1729_v13 = vsel %vm577_vm1, %v468_v3, -1e+30 }
 0x1c7   :  { %v1231_v4 = vpop.f32.mrb[4].mxu1 }
 0x1c8   :  { %v489_v6 = vadd.f32 %v1231_v4, %v1675_v45  ;;  %v480_v7 = vpop.f32.mrb[5].mxu1  ;;  %624 = vmax.xlane.f32.xlu1 %v1716_v5 }
 0x1c9   :  { %v1232_v8 = vpop.f32.mrb[6].mxu1  ;;  %v481_v9 = vadd.f32 %v1675_v45, %v480_v7 }
 0x1ca   :  { %v483_v10 = vpop.f32.mrb[7].mxu1  ;;  %v1723_v11 = vsel %vm577_vm1, %v489_v6, -1e+30  ;;  %v492_v12 = vadd.f32 %v1232_v8, %v1675_v45 }
 0x1cb   :  { %630 = vmax.xlane.f32.xlu0 %v1723_v11  ;;  %v1734_v14 = vsel %vm577_vm1, %v481_v9, -1e+30  ;;  %v484_v15 = vadd.f32 %v1675_v45, %v483_v10 }
 0x1cc   :  { %620 = vmax.xlane.f32.xlu1 %v1729_v13  ;;  %v1740_v17 = vsel %vm577_vm1, %v492_v12, -1e+30 }
 0x1cd   :  { %v1753_v25 = vsel %vm577_vm1, %v484_v15, -1e+30 }
 0x1cf   :  { %v1235_v16 = vpop.f32.mrb[8].mxu1  ;;  %626 = vmax.xlane.f32.xlu0 %v1734_v14 }
 0x1d0   :  { %v505_v18 = vadd.f32 %v1235_v16, %v1675_v45  ;;  %v496_v19 = vpop.f32.mrb[9].mxu1  ;;  %632 = vmax.xlane.f32.xlu1 %v1740_v17 }
 0x1d1   :  { %v1236_v20 = vpop.f32.mrb[10].mxu1  ;;  %v497_v21 = vadd.f32 %v1675_v45, %v496_v19 }
 0x1d2   :  { %v499_v22 = vpop.f32.mrb[11].mxu1  ;;  %v1747_v23 = vsel %vm577_vm1, %v505_v18, -1e+30  ;;  %v508_v24 = vadd.f32 %v1236_v20, %v1675_v45 }
 0x1d3   :  { %638 = vmax.xlane.f32.xlu0 %v1747_v23  ;;  %v1758_v26 = vsel %vm577_vm1, %v497_v21, -1e+30  ;;  %v500_v27 = vadd.f32 %v1675_v45, %v499_v22 }
 0x1d4   :  { %628 = vmax.xlane.f32.xlu1 %v1753_v25  ;;  %v1764_v29 = vsel %vm577_vm1, %v508_v24, -1e+30 }
 0x1d5   :  { %v1777_v37 = vsel %vm577_vm1, %v500_v27, -1e+30 }
 0x1d7   :  { %v1239_v28 = vpop.f32.mrb[12].mxu1  ;;  %634 = vmax.xlane.f32.xlu0 %v1758_v26 }
 0x1d8   :  { %v521_v30 = vadd.f32 %v1239_v28, %v1675_v45  ;;  %v512_v31 = vpop.f32.mrb[13].mxu1  ;;  %640 = vmax.xlane.f32.xlu1 %v1764_v29 }
 0x1d9   :  { %v1240_v32 = vpop.f32.mrb[14].mxu1  ;;  %v513_v33 = vadd.f32 %v1675_v45, %v512_v31 }
 0x1da   :  { %v515_v34 = vpop.f32.mrb[15].mxu1  ;;  %v1771_v35 = vsel %vm577_vm1, %v521_v30, -1e+30  ;;  %v524_v36 = vadd.f32 %v1240_v32, %v1675_v45 }
 0x1db   :  { %646 = vmax.xlane.f32.xlu0 %v1771_v35  ;;  %v1782_v38 = vsel %vm577_vm1, %v513_v33, -1e+30  ;;  %v516_v39 = vadd.f32 %v1675_v45, %v515_v34 }
 0x1dc   :  { %636 = vmax.xlane.f32.xlu1 %v1777_v37  ;;  %v1788_v41 = vsel %vm577_vm1, %v524_v36, -1e+30 }
 0x1dd   :  { %v1801_v50 = vsel %vm577_vm1, %v516_v39, -1e+30 }
 0x1df   :  { %v1243_v40 = vpop.f32.mrb[16].mxu1  ;;  %642 = vmax.xlane.f32.xlu0 %v1782_v38 }
 0x1e0   :  { %v537_v42 = vadd.f32 %v1243_v40, %v1675_v45  ;;  %v528_v43 = vpop.f32.mrb[17].mxu1  ;;  %648 = vmax.xlane.f32.xlu1 %v1788_v41 }
 0x1e1   :  { %v1244_v46 = vpop.f32.mrb[18].mxu1  ;;  %v529_v47 = vadd.f32 %v1675_v45, %v528_v43 }
 0x1e2   :  { %v531_v57 = vpop.f32.mrb[19].mxu1  ;;  %v1795_v48 = vsel %vm577_vm1, %v537_v42, -1e+30  ;;  %v540_v49 = vadd.f32 %v1244_v46, %v1675_v45 }
 0x1e3   :  { %654 = vmax.xlane.f32.xlu0 %v1795_v48  ;;  %v1806_v51 = vsel %vm577_vm1, %v529_v47, -1e+30  ;;  %v532_v53 = vadd.f32 %v1675_v45, %v531_v57 }
 0x1e4   :  { %644 = vmax.xlane.f32.xlu1 %v1801_v50  ;;  %v1812_v59 = vsel %vm577_vm1, %v540_v49, -1e+30 }
 0x1e5   :  { %v1825_v6 = vsel %vm577_vm1, %v532_v53, -1e+30 }
 0x1e7   :  { %v1247_v58 = vpop.f32.mrb[20].mxu1  ;;  %650 = vmax.xlane.f32.xlu0 %v1806_v51 }
 0x1e8   :  { %v553_v60 = vadd.f32 %v1247_v58, %v1675_v45  ;;  %v544_v61 = vpop.f32.mrb[21].mxu1  ;;  %656 = vmax.xlane.f32.xlu1 %v1812_v59 }
 0x1e9   :  { %v1248_v62 = vpop.f32.mrb[22].mxu1  ;;  %v545_v63 = vadd.f32 %v1675_v45, %v544_v61 }
 0x1ea   :  { %v547_v1 = vpop.f32.mrb[23].mxu1  ;;  %v1819_v3 = vsel %vm577_vm1, %v553_v60, -1e+30  ;;  %v556_v4 = vadd.f32 %v1248_v62, %v1675_v45 }
 0x1eb   :  { %662 = vmax.xlane.f32.xlu0 %v1819_v3  ;;  %v1830_v7 = vsel %vm577_vm1, %v545_v63, -1e+30  ;;  %v548_v8 = vadd.f32 %v1675_v45, %v547_v1 }
 0x1ec   :  { %652 = vmax.xlane.f32.xlu1 %v1825_v6  ;;  %v1836_v10 = vsel %vm577_vm1, %v556_v4, -1e+30 }
 0x1ed   :  { %v1845_v22 = vsel %vm577_vm1, %v548_v8, -1e+30 }
 0x1ef   :  { %v1251_v9 = vpop.f32.mrb[24].mxu1  ;;  %658 = vmax.xlane.f32.xlu0 %v1830_v7 }
 0x1f0   :  { %v560_v12 = vpop.f32.mrb[25].mxu1  ;;  %664 = vmax.xlane.f32.xlu1 %v1836_v10  ;;  %v569_v20 = vadd.f32 %v1251_v9, %v1675_v45 }
 0x1f1   :  { %v561_v15 = vadd.f32 %v1675_v45, %v560_v12  ;;  %v1252_v16 = vpop.f32.mrb[26].mxu1 }
 0x1f2   :  { %v572_v18 = vadd.f32 %v1252_v16, %v1675_v45  ;;  %v563_v19 = vpop.f32.mrb[27].mxu1 }
 0x1f3   :  { %v564_v21 = vadd.f32 %v1675_v45, %v563_v19  ;;  %v1849_v24 = vsel %vm577_vm1, %v561_v15, -1e+30  ;;  %v1863_v45 = vsel %vm577_vm1, %v569_v20, -1e+30 }
 0x1f4   :  { %660 = vmax.xlane.f32.xlu1 %v1845_v22  ;;  %666 = vmax.xlane.f32.xlu0 %v1849_v24  ;;  %v1855_v27 = vsel %vm577_vm1, %v572_v18, -1e+30 }
 0x1f5   :  { %v1859_v28 = vsel %vm577_vm1, %v564_v21, -1e+30  ;;  %vm1063_vm1 = vcmask 1048512  }
 0x1f8   :  { %668 = vmax.xlane.f32.xlu1 %v1859_v28  ;;  %670 = vmax.xlane.f32.xlu0 %v1863_v45 }
 0x1fc   :  { %672 = vmax.xlane.f32.xlu1 %v1855_v27  ;;  %610 = vmax.xlane.f32.xlu0 %v1689_v54 }
 0x200   :  { %612 = vmax.xlane.f32.xlu1 %v1693_v55 }
 0x248   :  { %v615_v30 = vpop.xlane.xlu0 %614 }
 0x249   :  { %v676_v31 = vsub.f32 %v1683_v52, %v615_v30 }
 0x24b   :  { %v710_v32 = vmul.f32 1.442695, %v676_v31 }
 0x24c   :  { %v617_v33 = vpop.xlane.xlu0 %616 }
 0x24d   :  { %1295 = vpow2.f32 %v710_v32  ;;  %v677_v44 = vsub.f32 %v1697_v56, %v617_v33 }
 0x24f   :  { %v712_v34 = vmul.f32 1.442695, %v677_v44 }
 0x250   :  { %v623_v36 = vpop.xlane.xlu0 %622 }
 0x251   :  { %1297 = vpow2.f32 %v712_v34  ;;  %v680_v39 = vsub.f32 %v1704_v0, %v623_v36  ;;  %v619_v40 = vpop.xlane.xlu1 %618 }
 0x252   :  { %v678_v42 = vsub.f32 %v1710_v2, %v619_v40 }
 0x253   :  { %v718_v43 = vmul.f32 1.442695, %v680_v39 }
 0x254   :  { %v714_v46 = vmul.f32 1.442695, %v678_v42 }
 0x255   :  { %1299 = vpow2.f32 %v718_v43  ;;  %v625_v47 = vpop.xlane.xlu1 %624 }
 0x256   :  { %v681_v57 = vsub.f32 %v1716_v5, %v625_v47  ;;  %1301 = vpow2.f32 %v714_v46 }
 0x257   :  { %v1875_v52 = vpop.eup %1295 }
 0x258   :  { %v720_v49 = vmul.f32 1.442695, %v681_v57  ;;  %v631_v53 = vpop.xlane.xlu0 %630  ;;  %774 = vadd.xlane.f32.xlu0 %v1875_v52 }
 0x259   :  { %v684_v56 = vsub.f32 %v1723_v11, %v631_v53  ;;  %v621_v58 = vpop.xlane.xlu1 %620 }
 0x25a   :  { %1303 = vpow2.f32 %v720_v49  ;;  %v679_v0 = vsub.f32 %v1729_v13, %v621_v58 }
 0x25b   :  { %v1880_v2 = vpop.eup %1297  ;;  %v726_v60 = vmul.f32 1.442695, %v684_v56 }
 0x25c   :  { %v716_v61 = vmul.f32 1.442695, %v679_v0  ;;  %v627_v62 = vpop.xlane.xlu0 %626  ;;  %776 = vadd.xlane.f32.xlu1 %v1880_v2 }
 0x25d   :  { %1305 = vpow2.f32 %v726_v60  ;;  %v682_v5 = vsub.f32 %v1734_v14, %v627_v62  ;;  %v633_v63 = vpop.xlane.xlu1 %632 }
 0x25e   :  { %1307 = vpow2.f32 %v716_v61  ;;  %v685_v1 = vsub.f32 %v1740_v17, %v633_v63 }
 0x25f   :  { %v1885_v4 = vpop.eup %1299  ;;  %v722_v11 = vmul.f32 1.442695, %v682_v5 }
 0x260   :  { %v728_v8 = vmul.f32 1.442695, %v685_v1  ;;  %v639_v9 = vpop.xlane.xlu0 %638  ;;  %782 = vadd.xlane.f32.xlu0 %v1885_v4  ;;  %v1890_v16 = vpop.eup %1301 }
 0x261   :  { %1309 = vpow2.f32 %v722_v11  ;;  %v688_v13 = vsub.f32 %v1747_v23, %v639_v9  ;;  %v629_v12 = vpop.xlane.xlu1 %628 }
 0x262   :  { %1311 = vpow2.f32 %v728_v8  ;;  %v683_v15 = vsub.f32 %v1753_v25, %v629_v12 }
 0x263   :  { %v734_v14 = vmul.f32 1.442695, %v688_v13 }
 0x264   :  { %v1892_v18 = vpop.eup %1303  ;;  %v724_v17 = vmul.f32 1.442695, %v683_v15  ;;  %v635_v19 = vpop.xlane.xlu0 %634  ;;  %778 = vadd.xlane.f32.xlu0 %v1890_v16 }
 0x265   :  { %1313 = vpow2.f32 %v734_v14  ;;  %v686_v20 = vsub.f32 %v1758_v26, %v635_v19  ;;  %v641_v21 = vpop.xlane.xlu1 %640  ;;  %784 = vadd.xlane.f32.xlu1 %v1892_v18 }
 0x266   :  { %1315 = vpow2.f32 %v724_v17  ;;  %v689_v23 = vsub.f32 %v1764_v29, %v641_v21 }
 0x267   :  { %v1898_v30 = vpop.eup %1305  ;;  %v730_v25 = vmul.f32 1.442695, %v686_v20 }
 0x268   :  { %v1900_v31 = vpop.eup %1307  ;;  %v736_v32 = vmul.f32 1.442695, %v689_v23  ;;  %v647_v33 = vpop.xlane.xlu0 %646  ;;  %790 = vadd.xlane.f32.xlu0 %v1898_v30 }
 0x269   :  { %1317 = vpow2.f32 %v730_v25  ;;  %v692_v44 = vsub.f32 %v1771_v35, %v647_v33  ;;  %v637_v34 = vpop.xlane.xlu1 %636  ;;  %780 = vadd.xlane.f32.xlu1 %v1900_v31 }
 0x26a   :  { %1319 = vpow2.f32 %v736_v32  ;;  %v687_v26 = vsub.f32 %v1777_v37, %v637_v34 }
 0x26b   :  { %v1906_v36 = vpop.eup %1309  ;;  %v742_v29 = vmul.f32 1.442695, %v692_v44 }
 0x26c   :  { %v1908_v39 = vpop.eup %1311  ;;  %v732_v40 = vmul.f32 1.442695, %v687_v26  ;;  %v643_v42 = vpop.xlane.xlu0 %642  ;;  %786 = vadd.xlane.f32.xlu0 %v1906_v36 }
 0x26d   :  { %1321 = vpow2.f32 %v742_v29  ;;  %v690_v43 = vsub.f32 %v1782_v38, %v643_v42  ;;  %v649_v46 = vpop.xlane.xlu1 %648  ;;  %792 = vadd.xlane.f32.xlu1 %v1908_v39 }
 0x26e   :  { %1323 = vpow2.f32 %v732_v40  ;;  %v693_v35 = vsub.f32 %v1788_v41, %v649_v46 }
 0x26f   :  { %v1914_v47 = vpop.eup %1313  ;;  %v738_v37 = vmul.f32 1.442695, %v690_v43 }
 0x270   :  { %v1916_v57 = vpop.eup %1315  ;;  %v744_v49 = vmul.f32 1.442695, %v693_v35  ;;  %v655_v53 = vpop.xlane.xlu0 %654  ;;  %798 = vadd.xlane.f32.xlu0 %v1914_v47 }
 0x271   :  { %1325 = vpow2.f32 %v738_v37  ;;  %v696_v56 = vsub.f32 %v1795_v48, %v655_v53  ;;  %v645_v58 = vpop.xlane.xlu1 %644  ;;  %788 = vadd.xlane.f32.xlu1 %v1916_v57 }
 0x272   :  { %1327 = vpow2.f32 %v744_v49  ;;  %v691_v38 = vsub.f32 %v1801_v50, %v645_v58 }
 0x273   :  { %v1922_v0 = vpop.eup %1317  ;;  %v750_v41 = vmul.f32 1.442695, %v696_v56 }
 0x274   :  { %v1924_v60 = vpop.eup %1319  ;;  %v740_v61 = vmul.f32 1.442695, %v691_v38  ;;  %v651_v62 = vpop.xlane.xlu0 %650  ;;  %794 = vadd.xlane.f32.xlu0 %v1922_v0 }
 0x275   :  { %1329 = vpow2.f32 %v750_v41  ;;  %v694_v5 = vsub.f32 %v1806_v51, %v651_v62  ;;  %v657_v63 = vpop.xlane.xlu1 %656  ;;  %800 = vadd.xlane.f32.xlu1 %v1924_v60 }
 0x276   :  { %1331 = vpow2.f32 %v740_v61  ;;  %v697_v48 = vsub.f32 %v1812_v59, %v657_v63 }
 0x277   :  { %v1930_v1 = vpop.eup %1321  ;;  %v746_v50 = vmul.f32 1.442695, %v694_v5 }
 0x278   :  { %v1932_v11 = vpop.eup %1323  ;;  %v752_v8 = vmul.f32 1.442695, %v697_v48  ;;  %v663_v9 = vpop.xlane.xlu0 %662  ;;  %806 = vadd.xlane.f32.xlu0 %v1930_v1 }
 0x279   :  { %1333 = vpow2.f32 %v746_v50  ;;  %v700_v13 = vsub.f32 %v1819_v3, %v663_v9  ;;  %v653_v12 = vpop.xlane.xlu1 %652  ;;  %796 = vadd.xlane.f32.xlu1 %v1932_v11 }
 0x27a   :  { %1335 = vpow2.f32 %v752_v8  ;;  %v695_v51 = vsub.f32 %v1825_v6, %v653_v12 }
 0x27b   :  { %v1938_v15 = vpop.eup %1325  ;;  %v758_v59 = vmul.f32 1.442695, %v700_v13 }
 0x27c   :  { %v1940_v14 = vpop.eup %1327  ;;  %v748_v17 = vmul.f32 1.442695, %v695_v51  ;;  %v659_v19 = vpop.xlane.xlu0 %658  ;;  %802 = vadd.xlane.f32.xlu0 %v1938_v15 }
 0x27d   :  { %1337 = vpow2.f32 %v758_v59  ;;  %v698_v20 = vsub.f32 %v1830_v7, %v659_v19  ;;  %v665_v21 = vpop.xlane.xlu1 %664  ;;  %808 = vadd.xlane.f32.xlu1 %v1940_v14 }
 0x27e   :  { %1339 = vpow2.f32 %v748_v17  ;;  %v701_v3 = vsub.f32 %v1836_v10, %v665_v21 }
 0x27f   :  { %v1946_v23 = vpop.eup %1329  ;;  %v754_v6 = vmul.f32 1.442695, %v698_v20 }
 0x280   :  { %v1948_v25 = vpop.eup %1331  ;;  %v760_v32 = vmul.f32 1.442695, %v701_v3  ;;  %814 = vadd.xlane.f32.xlu0 %v1946_v23 }
 0x281   :  { %1341 = vpow2.f32 %v754_v6  ;;  %v661_v33 = vpop.xlane.xlu1 %660  ;;  %v667_v44 = vpop.xlane.xlu0 %666  ;;  %804 = vadd.xlane.f32.xlu1 %v1948_v25 }
 0x282   :  { %1343 = vpow2.f32 %v760_v32  ;;  %v699_v7 = vsub.f32 %v1845_v22, %v661_v33  ;;  %v702_v46 = vsub.f32 %v1849_v24, %v667_v44 }
 0x283   :  { %v1953_v34 = vpop.eup %1333 }
 0x284   :  { %v1955_v26 = vpop.eup %1335  ;;  %v756_v10 = vmul.f32 1.442695, %v699_v7  ;;  %810 = vadd.xlane.f32.xlu0 %v1953_v34  ;;  %v762_v56 = vmul.f32 1.442695, %v702_v46 }
 0x285   :  { %v669_v29 = vpop.xlane.xlu1 %668  ;;  %v671_v40 = vpop.xlane.xlu0 %670  ;;  %816 = vadd.xlane.f32.xlu1 %v1955_v26 }
 0x286   :  { %1345 = vpow2.f32 %v756_v10  ;;  %v704_v42 = vsub.f32 %v1863_v45, %v671_v40 }
 0x287   :  { %v1960_v43 = vpop.eup %1337 }
 0x288   :  { %v1963_v35 = vpop.eup %1339  ;;  %v766_v22 = vmul.f32 1.442695, %v704_v42  ;;  %822 = vadd.xlane.f32.xlu0 %v1960_v43 }
 0x289   :  { %v673_v37 = vpop.xlane.xlu1 %672  ;;  %812 = vadd.xlane.f32.xlu1 %v1963_v35  ;;  %v611_v49 = vpop.xlane.xlu0 %610 }
 0x28a   :  { %1347 = vpow2.f32 %v766_v22  ;;  %v674_v58 = vsub.f32 %v1689_v54, %v611_v49  ;;  %v705_v38 = vsub.f32 %v1855_v27, %v673_v37  ;;  %v703_v54 = vsub.f32 %v1859_v28, %v669_v29 }
 0x28b   :  { %v1967_v53 = vpop.eup %1341  ;;  %1349 = vpow2.f32 %v762_v56 }
 0x28c   :  { %v1970_v45 = vpop.eup %1343  ;;  %818 = vadd.xlane.f32.xlu0 %v1967_v53  ;;  %v706_v61 = vmul.f32 1.442695, %v674_v58  ;;  %v768_v63 = vmul.f32 1.442695, %v705_v38  ;;  %v764_v50 = vmul.f32 1.442695, %v703_v54 }
 0x28d   :  { %824 = vadd.xlane.f32.xlu1 %v1970_v45  ;;  %v613_v24 = vpop.xlane.xlu1 %612 }
 0x28e   :  { %v675_v41 = vsub.f32 %v1693_v55, %v613_v24 }
 0x290   :  { %v1976_v62 = vpop.eup %1345  ;;  %v708_v5 = vmul.f32 1.442695, %v675_v41 }
 0x291   :  { %820 = vadd.xlane.f32.xlu1 %v1976_v62 }
 0x292   :  { %1351 = vpow2.f32 %v708_v5 }
 0x293   :  { %1353 = vpow2.f32 %v706_v61 }
 0x294   :  { %v1980_v48 = vpop.eup %1347  ;;  %1355 = vpow2.f32 %v768_v63 }
 0x295   :  { %830 = vadd.xlane.f32.xlu0 %v1980_v48  ;;  %v1983_v27 = vpop.eup %1349  ;;  %1357 = vpow2.f32 %v764_v50 }
 0x299   :  { %826 = vadd.xlane.f32.xlu0 %v1983_v27 }
 0x29c   :  { %v1986_v55 = vpop.eup %1351 }
 0x29d   :  { %v1988_v8 = vpop.eup %1353  ;;  %772 = vadd.xlane.f32.xlu1 %v1986_v55 }
 0x29e   :  { %770 = vadd.xlane.f32.xlu0 %v1988_v8  ;;  %v1992_v28 = vpop.eup %1355 }
 0x29f   :  { %v1995_v9 = vpop.eup %1357 }
 0x2a1   :  { %832 = vadd.xlane.f32.xlu1 %v1992_v28 }
 0x2a5   :  { %828 = vadd.xlane.f32.xlu1 %v1995_v9 }
 0x2e5   :  { %v775_v13 = vpop.xlane.xlu0 %774 }
 0x2e6   :  { %1359 = vrcp.f32 %v775_v13 }
 0x2e9   :  { %v777_v12 = vpop.xlane.xlu1 %776 }
 0x2ea   :  { %1361 = vrcp.f32 %v777_v12 }
 0x2ed   :  { %v783_v51 = vpop.xlane.xlu0 %782 }
 0x2ee   :  { %1363 = vrcp.f32 %v783_v51 }
 0x2f0   :  { %v1360_v59 = vpop.eup %1359 }
 0x2f1   :  { %v779_v17 = vpop.xlane.xlu0 %778  ;;  %v839_v19 = vmul.f32 %v1360_v59, %v1875_v52 }
 0x2f2   :  { %1365 = vrcp.f32 %v779_v17  ;;  %v785_v20 = vpop.xlane.xlu1 %784 }
 0x2f3   :  { %903 = vrot.lane.b32.xlu0 %v839_v19, %s1447_s4  ;;  %1367 = vrcp.f32 %v785_v20 }
 0x2f4   :  { %v1362_v21 = vpop.eup %1361 }
 0x2f5   :  { %v791_v3 = vpop.xlane.xlu0 %790  ;;  %v841_v6 = vmul.f32 %v1362_v21, %v1880_v2 }
 0x2f6   :  { %1369 = vrcp.f32 %v791_v3  ;;  %v781_v32 = vpop.xlane.xlu1 %780 }
 0x2f7   :  { %905 = vrot.lane.b32.xlu1 %v841_v6, %s1447_s4  ;;  %1371 = vrcp.f32 %v781_v32 }
 0x2f8   :  { %v1364_v33 = vpop.eup %1363 }
 0x2f9   :  { %v787_v44 = vpop.xlane.xlu0 %786  ;;  %v847_v7 = vmul.f32 %v1364_v33, %v1885_v4 }
 0x2fa   :  { %1373 = vrcp.f32 %v787_v44  ;;  %v793_v10 = vpop.xlane.xlu1 %792 }
 0x2fb   :  { %925 = vrot.lane.b32.xlu0 %v847_v7, %s1448_s23  ;;  %1375 = vrcp.f32 %v793_v10 }
 0x2fc   :  { %v1366_v52 = vpop.eup %1365 }
 0x2fd   :  { %v799_v29 = vpop.xlane.xlu0 %798  ;;  %v843_v40 = vmul.f32 %v1366_v52, %v1890_v16  ;;  %v1368_v42 = vpop.eup %1367 }
 0x2fe   :  { %1377 = vrcp.f32 %v799_v29  ;;  %v789_v2 = vpop.xlane.xlu1 %788  ;;  %v849_v37 = vmul.f32 %v1368_v42, %v1892_v18 }
 0x2ff   :  { %914 = vrot.lane.b32.xlu1 %v843_v40, %s1449_s24  ;;  %1379 = vrcp.f32 %v789_v2 }
 0x300   :  { %v1370_v46 = vpop.eup %1369 }
 0x301   :  { %v795_v22 = vpop.xlane.xlu0 %794  ;;  %v855_v4 = vmul.f32 %v1370_v46, %v1898_v30  ;;  %v1372_v49 = vpop.eup %1371 }
 0x302   :  { %1381 = vrcp.f32 %v795_v22  ;;  %v801_v56 = vpop.xlane.xlu1 %800  ;;  %v845_v24 = vmul.f32 %v1372_v49, %v1900_v31 }
 0x303   :  { %927 = vrot.lane.b32.xlu1 %v849_v37, %s1448_s23  ;;  %947 = vrot.lane.b32.xlu0 %v855_v4, %s1450_s25  ;;  %1383 = vrcp.f32 %v801_v56 }
 0x304   :  { %v1374_v58 = vpop.eup %1373 }
 0x305   :  { %v807_v16 = vpop.xlane.xlu0 %806  ;;  %v851_v38 = vmul.f32 %v1374_v58, %v1906_v36  ;;  %v1376_v41 = vpop.eup %1375 }
 0x306   :  { %1385 = vrcp.f32 %v807_v16  ;;  %v797_v61 = vpop.xlane.xlu1 %796  ;;  %v857_v5 = vmul.f32 %v1376_v41, %v1908_v39 }
 0x307   :  { %916 = vrot.lane.b32.xlu1 %v845_v24, %s1449_s24  ;;  %936 = vrot.lane.b32.xlu0 %v851_v38, %s1451_s26  ;;  %1387 = vrcp.f32 %v797_v61 }
 0x308   :  { %v1378_v18 = vpop.eup %1377 }
 0x309   :  { %v803_v30 = vpop.xlane.xlu0 %802  ;;  %v863_v54 = vmul.f32 %v1378_v18, %v1914_v47  ;;  %v1380_v63 = vpop.eup %1379 }
 0x30a   :  { %1389 = vrcp.f32 %v803_v30  ;;  %v809_v50 = vpop.xlane.xlu1 %808  ;;  %v853_v13 = vmul.f32 %v1380_v63, %v1916_v57 }
 0x30b   :  { %949 = vrot.lane.b32.xlu1 %v857_v5, %s1450_s25  ;;  %969 = vrot.lane.b32.xlu0 %v863_v54, %s1452_s27  ;;  %1391 = vrcp.f32 %v809_v50 }
 0x30c   :  { %v1382_v31 = vpop.eup %1381 }
 0x30d   :  { %v815_v36 = vpop.xlane.xlu0 %814  ;;  %v859_v12 = vmul.f32 %v1382_v31, %v1922_v0  ;;  %v1384_v51 = vpop.eup %1383 }
 0x30e   :  { %1393 = vrcp.f32 %v815_v36  ;;  %v805_v59 = vpop.xlane.xlu1 %804  ;;  %v865_v17 = vmul.f32 %v1384_v51, %v1924_v60 }
 0x30f   :  { %938 = vrot.lane.b32.xlu1 %v853_v13, %s1451_s26  ;;  %958 = vrot.lane.b32.xlu0 %v859_v12, %s1453_s1  ;;  %1395 = vrcp.f32 %v805_v59 }
 0x310   :  { %v1386_v39 = vpop.eup %1385 }
 0x311   :  { %v811_v47 = vpop.xlane.xlu0 %810  ;;  %v871_v19 = vmul.f32 %v1386_v39, %v1930_v1  ;;  %v1388_v20 = vpop.eup %1387 }
 0x312   :  { %1397 = vrcp.f32 %v811_v47  ;;  %v817_v21 = vpop.xlane.xlu1 %816  ;;  %v861_v3 = vmul.f32 %v1388_v20, %v1932_v11 }
 0x313   :  { %971 = vrot.lane.b32.xlu1 %v865_v17, %s1452_s27  ;;  %991 = vrot.lane.b32.xlu0 %v871_v19, %s1454_s28  ;;  %1399 = vrcp.f32 %v817_v21 }
 0x314   :  { %v1390_v57 = vpop.eup %1389 }
 0x315   :  { %v823_v0 = vpop.xlane.xlu0 %822  ;;  %v867_v6 = vmul.f32 %v1390_v57, %v1938_v15  ;;  %v1392_v32 = vpop.eup %1391 }
 0x316   :  { %1401 = vrcp.f32 %v823_v0  ;;  %v813_v33 = vpop.xlane.xlu1 %812  ;;  %v873_v44 = vmul.f32 %v1392_v32, %v1940_v14 }
 0x317   :  { %960 = vrot.lane.b32.xlu1 %v861_v3, %s1453_s1  ;;  %980 = vrot.lane.b32.xlu0 %v867_v6, %s1455_s29  ;;  %1403 = vrcp.f32 %v813_v33 }
 0x318   :  { %v1394_v60 = vpop.eup %1393 }
 0x319   :  { %v819_v1 = vpop.xlane.xlu0 %818  ;;  %v879_v7 = vmul.f32 %v1394_v60, %v1946_v23  ;;  %v1396_v10 = vpop.eup %1395 }
 0x31a   :  { %1405 = vrcp.f32 %v819_v1  ;;  %v825_v52 = vpop.xlane.xlu1 %824  ;;  %v869_v15 = vmul.f32 %v1396_v10, %v1948_v25 }
 0x31b   :  { %993 = vrot.lane.b32.xlu1 %v873_v44, %s1454_s28  ;;  %1013 = vrot.lane.b32.xlu0 %v879_v7, %s1456_s30  ;;  %1407 = vrcp.f32 %v825_v52 }
 0x31c   :  { %v1398_v11 = vpop.eup %1397 }
 0x31d   :  { %v875_v29 = vmul.f32 %v1398_v11, %v1953_v34  ;;  %v1400_v40 = vpop.eup %1399 }
 0x31e   :  { %v821_v42 = vpop.xlane.xlu1 %820  ;;  %v881_v23 = vmul.f32 %v1400_v40, %v1955_v26 }
 0x31f   :  { %982 = vrot.lane.b32.xlu1 %v869_v15, %s1455_s29  ;;  %1002 = vrot.lane.b32.xlu0 %v875_v29, %s1457_s6  ;;  %1409 = vrcp.f32 %v821_v42 }
 0x320   :  { %v1402_v14 = vpop.eup %1401 }
 0x321   :  { %v887_v2 = vmul.f32 %v1402_v14, %v1960_v43  ;;  %v1404_v46 = vpop.eup %1403 }
 0x322   :  { %v831_v22 = vpop.xlane.xlu0 %830  ;;  %v877_v34 = vmul.f32 %v1404_v46, %v1963_v35 }
 0x323   :  { %1015 = vrot.lane.b32.xlu1 %v881_v23, %s1456_s30  ;;  %1035 = vrot.lane.b32.xlu0 %v887_v2, %s1458_s7 }
 0x324   :  { %v1406_v25 = vpop.eup %1405 }
 0x325   :  { %v883_v37 = vmul.f32 %v1406_v25, %v1967_v53  ;;  %v1408_v4 = vpop.eup %1407 }
 0x326   :  { %v827_v49 = vpop.xlane.xlu0 %826  ;;  %v889_v26 = vmul.f32 %v1408_v4, %v1970_v45 }
 0x327   :  { %1004 = vrot.lane.b32.xlu1 %v877_v34, %s1457_s6  ;;  %1024 = vrot.lane.b32.xlu0 %v883_v37, %s1459_s8  ;;  %1411 = vrcp.f32 %v827_v49 }
 0x328   :  { %1413 = vrcp.f32 %v831_v22 }
 0x329   :  { %v1410_v56 = vpop.eup %1409 }
 0x32a   :  { %v773_v43 = vpop.xlane.xlu1 %772  ;;  %v885_v16 = vmul.f32 %v1410_v56, %v1976_v62 }
 0x32b   :  { %1415 = vrcp.f32 %v773_v43  ;;  %v771_v58 = vpop.xlane.xlu0 %770  ;;  %1037 = vrot.lane.b32.xlu1 %v889_v26, %s1458_s7 }
 0x32c   :  { %1417 = vrcp.f32 %v771_v58 }
 0x32e   :  { %v833_v35 = vpop.xlane.xlu1 %832 }
 0x32f   :  { %1026 = vrot.lane.b32.xlu1 %v885_v16, %s1459_s8 }
 0x331   :  { %v1412_v53 = vpop.eup %1411 }
 0x332   :  { %v829_v24 = vpop.xlane.xlu1 %828  ;;  %v891_v38 = vmul.f32 %v1412_v53, %v1983_v27  ;;  %v1414_v41 = vpop.eup %1413 }
 0x333   :  { %1419 = vrcp.f32 %v829_v24  ;;  %v895_v30 = vmul.f32 %v1414_v41, %v1980_v48 }
 0x334   :  { %1421 = vrcp.f32 %v833_v35  ;;  %1046 = vrot.lane.b32.xlu0 %v891_v38, %s1460_s9 }
 0x335   :  { %v1416_v61 = vpop.eup %1415 }
 0x336   :  { %v1418_v45 = vpop.eup %1417  ;;  %v837_v18 = vmul.f32 %v1416_v61, %v1986_v55 }
 0x337   :  { %v835_v62 = vmul.f32 %v1418_v45, %v1988_v8 }
 0x338   :  { %900 = vst.msk [vmem:[#allocation2 + $0x8] sm:$0xff] %vm898_vm2, %v837_v18  ;;  %1057 = vrot.lane.b32.xlu0 %v895_v30, %s1461_s10 }
 0x339   :  { %899 = vst.msk [vmem:[#allocation2] sm:$0xff] %vm898_vm2, %v835_v62 }
 0x33d   :  { %v1420_v5 = vpop.eup %1419 }
 0x33e   :  { %v893_v27 = vmul.f32 %v1420_v5, %v1995_v9  ;;  %v1422_v54 = vpop.eup %1421 }
 0x33f   :  { %v897_v63 = vmul.f32 %v1422_v54, %v1992_v28 }
 0x340   :  { %1048 = vrot.lane.b32.xlu1 %v893_v27, %s1460_s9 }
 0x344   :  { %1059 = vrot.lane.b32.xlu1 %v897_v63, %s1461_s10 }
 0x365   :  { %v904_v50 = vpop.permute.xlu0 %903 }
 0x366   :  { %910 = vst.msk [vmem:[#allocation2] sm:$0xff] %vm909_vm3, %v904_v50 }
 0x369   :  { %v906_v55 = vpop.permute.xlu1 %905 }
 0x36a   :  { %911 = vst.msk [vmem:[#allocation2 + $0x8] sm:$0xff] %vm909_vm3, %v906_v55 }
 0x36d   :  { %v926_v48 = vpop.permute.xlu0 %925 }
 0x371   :  { %v915_v8 = vpop.permute.xlu1 %914 }
 0x372   :  { %921 = vst.msk [vmem:[#allocation2] sm:$0xff] %vm920_vm4, %v915_v8 }
 0x373   :  { %932 = vst.msk [vmem:[#allocation2] sm:$0xff] %vm931_vm5, %v926_v48 }
 0x375   :  { %v928_v31 = vpop.permute.xlu1 %927  ;;  %v948_v36 = vpop.permute.xlu0 %947 }
 0x379   :  { %v917_v9 = vpop.permute.xlu1 %916  ;;  %v937_v13 = vpop.permute.xlu0 %936 }
 0x37a   :  { %922 = vst.msk [vmem:[#allocation2 + $0x8] sm:$0xff] %vm920_vm4, %v917_v9 }
 0x37b   :  { %943 = vst.msk [vmem:[#allocation2] sm:$0xff] %vm942_vm6, %v937_v13 }
 0x37c   :  { %933 = vst.msk [vmem:[#allocation2 + $0x8] sm:$0xff] %vm931_vm5, %v928_v31 }
 0x37d   :  { %954 = vst.msk [vmem:[#allocation2] sm:$0xff] %vm953_vm7, %v948_v36  ;;  %v950_v28 = vpop.permute.xlu1 %949  ;;  %v970_v12 = vpop.permute.xlu0 %969 }
 0x381   :  { %v939_v51 = vpop.permute.xlu1 %938  ;;  %v959_v59 = vpop.permute.xlu0 %958 }
 0x382   :  { %944 = vst.msk [vmem:[#allocation2 + $0x8] sm:$0xff] %vm942_vm6, %v939_v51 }
 0x383   :  { %965 = vst.msk [vmem:[#allocation2] sm:$0xff] %vm964_vm8, %v959_v59 }
 0x384   :  { %955 = vst.msk [vmem:[#allocation2 + $0x8] sm:$0xff] %vm953_vm7, %v950_v28 }
 0x385   :  { %976 = vst.msk [vmem:[#allocation2] sm:$0xff] %vm975_vm9, %v970_v12  ;;  %v972_v39 = vpop.permute.xlu1 %971  ;;  %v992_v47 = vpop.permute.xlu0 %991 }
 0x389   :  { %v961_v17 = vpop.permute.xlu1 %960  ;;  %v981_v19 = vpop.permute.xlu0 %980 }
 0x38a   :  { %966 = vst.msk [vmem:[#allocation2 + $0x8] sm:$0xff] %vm964_vm8, %v961_v17 }
 0x38b   :  { %987 = vst.msk [vmem:[#allocation2] sm:$0xff] %vm986_vm10, %v981_v19 }
 0x38c   :  { %977 = vst.msk [vmem:[#allocation2 + $0x8] sm:$0xff] %vm975_vm9, %v972_v39 }
 0x38d   :  { %998 = vst.msk [vmem:[#allocation2] sm:$0xff] %vm997_vm11, %v992_v47  ;;  %v994_v20 = vpop.permute.xlu1 %993  ;;  %v1014_v21 = vpop.permute.xlu0 %1013 }
 0x391   :  { %v983_v57 = vpop.permute.xlu1 %982  ;;  %v1003_v0 = vpop.permute.xlu0 %1002 }
 0x392   :  { %988 = vst.msk [vmem:[#allocation2 + $0x8] sm:$0xff] %vm986_vm10, %v983_v57 }
 0x393   :  { %1009 = vst.msk [vmem:[#allocation2] sm:$0xff] %vm1008_vm12, %v1003_v0 }
 0x394   :  { %999 = vst.msk [vmem:[#allocation2 + $0x8] sm:$0xff] %vm997_vm11, %v994_v20 }
 0x395   :  { %1020 = vst.msk [vmem:[#allocation2] sm:$0xff] %vm1019_vm13, %v1014_v21  ;;  %v1016_v3 = vpop.permute.xlu1 %1015  ;;  %v1036_v6 = vpop.permute.xlu0 %1035 }
 0x399   :  { %v1005_v32 = vpop.permute.xlu1 %1004  ;;  %v1025_v33 = vpop.permute.xlu0 %1024 }
 0x39a   :  { %1010 = vst.msk [vmem:[#allocation2 + $0x8] sm:$0xff] %vm1008_vm12, %v1005_v32 }
 0x39b   :  { %1031 = vst.msk [vmem:[#allocation2] sm:$0xff] %vm1030_vm14, %v1025_v33 }
 0x39c   :  { %1021 = vst.msk [vmem:[#allocation2 + $0x8] sm:$0xff] %vm1019_vm13, %v1016_v3 }
 0x39d   :  { %1042 = vst.msk [vmem:[#allocation2] sm:$0xff] %vm1041_vm15, %v1036_v6  ;;  %v1038_v60 = vpop.permute.xlu1 %1037 }
 0x3a1   :  { %v1027_v1 = vpop.permute.xlu1 %1026 }
 0x3a2   :  { %1032 = vst.msk [vmem:[#allocation2 + $0x8] sm:$0xff] %vm1030_vm14, %v1027_v1 }
 0x3a3   :  { %1043 = vst.msk [vmem:[#allocation2 + $0x8] sm:$0xff] %vm1041_vm15, %v1038_v60 }
 0x3a6   :  { %v1047_v44 = vpop.permute.xlu0 %1046 }
 0x3a7   :  { %1053 = vst.msk [vmem:[#allocation2] sm:$0xff] %vm1052_vm0, %v1047_v44 }
 0x3aa   :  { %v1058_v7 = vpop.permute.xlu0 %1057 }
 0x3ab   :  { %1064 = vst.msk [vmem:[#allocation2] sm:$0xff] %vm1063_vm1, %v1058_v7 }
 0x3b2   :  { %v1049_v10 = vpop.permute.xlu1 %1048  ;;  %v1066_v11 = vld [vmem:[#allocation2] sm:$0xff] }
 0x3b3   :  { %1054 = vst.msk [vmem:[#allocation2 + $0x8] sm:$0xff] %vm1052_vm0, %v1049_v10 }
 0x3b6   :  { %v1060_v52 = vpop.permute.xlu1 %1059 }
 0x3b7   :  { %1065 = vst.msk [vmem:[#allocation2 + $0x8] sm:$0xff] %vm1063_vm1, %v1060_v52 }
 0x3be   :  { %v1067_v15 = vld [vmem:[#allocation2 + $0x8] sm:$0xff] }
 0x3bf   :  { %v1128_v29 = vpack.c.bf16 %v1067_v15, %v1066_v11 }
 0x3c1   :  { %1129 = vst [vmem:[#allocation3] sm:$0xff] %v1128_v29  }
 0x3c2   :  { %1434 = shalt.err (!%p1431_p4)
}
 0x3c3   :  { %s1435_s16 = scalar_lea.hbm %s2051_s5, 128 }
 0x3c4   :  { %p1436_p5 = scmp.ne.s32.totalorder %s2051_s5, %s1435_s16  ;;  %p1439_p6 = scmp.lt.u32.totalorder %s1435_s16, %s2051_s5 }
 0x3c6   :  { %p1441_p7 = pnand %p1439_p6, %p1436_p5 }
 0x3c8   :  { %1444 = shalt.err (!%p1441_p7)
}
 0x3c9   :  { %s1463_s21 = smov 4  }
 0x3ca   :  { %1089 = dma.vmem_to_hbm [thread:$0]  %s1084_s12, 128, %s2051_s5, [#allocation4], %s1455_s29, %s1455_s29, %s1463_s21  }
 0x3cb   :  { %1445 = dma.done.wait [#allocation4], 128  }
 0x3cc   :  { %1446 = vsyncadd [#allocation4], 4294967168 }
 0x3cd   :  { %1093 = vsyncpa [#allocation4], 1 }

</bundles_post_ra>
